<compile_context>
chip_gen: v7x
topology: tpu7x:2x2x1
jax: 0.10.0
libtpu: 0.0.40
codegen_flags: <defaults>
</compile_context>

<pallas_src>
import functools

import jax
import jax.numpy as jnp
from jax import lax
from jax.experimental import pallas as pl
from jax.experimental.pallas import tpu as pltpu


def _round_up(x, m):
    return (x + m - 1) // m * m


def _vmem_capacity_bytes():
    """Physical VMEM of the attached TPU; conservative default if unknown."""
    try:
        info = pltpu.get_tpu_info()
        cap = int(getattr(info, "vmem_capacity_bytes", 0) or 0)
        if cap > 0:
            return cap
    except Exception:
        pass
    return 64 << 20  # v7x has the smallest physical VMEM per TensorCore.


def _plan_tiles(rows, hw, itemsize, max_block_bytes):
    """Pick (mode, row_tile, hw_chunk).

    Budget accounting per grid step (double-buffered pipeline + f32 temps):
      fused:   4 arrays * 2 bufs * tr*hw*itemsize  + ~2 * tr*hw*4
      chunked: 3 arrays * 2 bufs * tr*thw*itemsize + ~2 * tr*thw*4
    """
    sublane = {4: 8, 2: 16, 1: 32}.get(itemsize, 8)
    min_tr = rows if rows < sublane else sublane

    fused_bytes_per_row = hw * (4 * 2 * itemsize + 2 * 4)
    if min_tr * max(fused_bytes_per_row, 1) <= max_block_bytes:
        if rows < sublane:
            return "fused", rows, hw  # tr == full row dim is always legal.
        tr = max_block_bytes // max(fused_bytes_per_row, 1)
        tr = max(sublane, min(tr, rows) // sublane * sublane)
        # Keep several grid steps so the DMA pipeline fills and both v7x
        # TensorCores get work; never go below one sublane pack.
        while tr > sublane and pl.cdiv(rows, tr) < 4:
            tr = max(sublane, (tr // 2) // sublane * sublane)
        return "fused", tr, hw

    # Chunked-HW fallback: even one sublane-pack of full rows doesn't fit.
    tr = min_tr
    thw = max_block_bytes // max(tr * (3 * 2 * itemsize + 2 * 4), 1)
    thw = max(128, thw // 128 * 128)
    if thw >= hw:
        thw = hw
    return "chunked", tr, thw


# ----------------------------------------------------------------------------
# Fused path: whole H*W per block, one pass, stats + apply in a single kernel.
# ----------------------------------------------------------------------------
def _adain_fused_kernel(x_ref, si_ref, so_ref, o_ref, *, eps, w1, w2, hw):
    inv_n = 1.0 / hw
    # PyTorch .var(dim=2) is unbiased (divides by N-1); hw == 1 would be NaN
    # in the original module — guard only the Python-level divide.
    inv_nm1 = 1.0 / max(hw - 1, 1)

    def row_stats(ref):
        v = ref[...].astype(jnp.float32)
        mean = jnp.sum(v, axis=-1, keepdims=True) * inv_n          # (TR, 1)
        d = v - mean
        var = jnp.sum(d * d, axis=-1, keepdims=True) * inv_nm1     # (TR, 1)
        return mean, var

    x_mean, x_var = row_stats(x_ref)
    si_mean, si_var = row_stats(si_ref)
    so_mean, so_var = row_stats(so_ref)

    # eps is added inside sqrt, matching (var + eps).sqrt() in the module.
    x_std = jnp.sqrt(x_var + eps)
    si_std = jnp.sqrt(si_var + eps)
    so_std = jnp.sqrt(so_var + eps)
    inv_x_std = lax.rsqrt(x_var + eps)

    w0 = 1.0 - w1 - w2
    mix_std = w0 * x_std + w1 * si_std + w2 * so_std
    mix_mean = w0 * x_mean + w1 * si_mean + w2 * so_mean

    # out = (x - x_mean) / x_std * mix_std + mix_mean  ==  x*ratio + offset
    ratio = mix_std * inv_x_std                                    # (TR, 1)
    offset = mix_mean - x_mean * ratio                             # (TR, 1)

    # Re-load x from its (resident) pipeline buffer for the apply FMA instead
    # of keeping an f32 copy live across the reductions (frees ~1 block VMEM).
    o_ref[...] = (x_ref[...].astype(jnp.float32) * ratio + offset).astype(o_ref.dtype)


# ----------------------------------------------------------------------------
# Chunked-HW fallback: pass 1 accumulates sum / sumsq per row over HW chunks,
# pass 2 applies the per-row FMA.
# ----------------------------------------------------------------------------
def _adain_stats_kernel(x_ref, si_ref, so_ref, ratio_ref, offset_ref,
                        xs, xq, ss, sq, ts, tq, *, eps, w1, w2, hw, thw):
    j = pl.program_id(1)
    nj = pl.num_programs(1)

    @pl.when(j == 0)
    def _():
        for r in (xs, xq, ss, sq, ts, tq):
            r[...] = jnp.zeros_like(r)

    if hw % thw != 0:
        lane = lax.broadcasted_iota(jnp.int32, x_ref.shape, dimension=1)
        valid = (j * thw + lane) < hw
    else:
        valid = None

    def accumulate(ref, s_acc, q_acc):
        v = ref[...].astype(jnp.float32)
        if valid is not None:
            v = jnp.where(valid, v, 0.0)
        s_acc[...] += jnp.sum(v, axis=-1, keepdims=True)
        q_acc[...] += jnp.sum(v * v, axis=-1, keepdims=True)

    accumulate(x_ref, xs, xq)
    accumulate(si_ref, ss, sq)
    accumulate(so_ref, ts, tq)

    @pl.when(j == nj - 1)
    def _():
        inv_n = 1.0 / hw
        inv_nm1 = 1.0 / max(hw - 1, 1)

        def finalize(s_acc, q_acc):
            mean = s_acc[...] * inv_n
            # Unbiased variance via sum/sumsq; clamp tiny negative rounding.
            var = jnp.maximum((q_acc[...] - s_acc[...] * mean) * inv_nm1, 0.0)
            return mean, var

        x_mean, x_var = finalize(xs, xq)
        si_mean, si_var = finalize(ss, sq)
        so_mean, so_var = finalize(ts, tq)

        x_std = jnp.sqrt(x_var + eps)
        si_std = jnp.sqrt(si_var + eps)
        so_std = jnp.sqrt(so_var + eps)

        w0 = 1.0 - w1 - w2
        mix_std = w0 * x_std + w1 * si_std + w2 * so_std
        mix_mean = w0 * x_mean + w1 * si_mean + w2 * so_mean

        ratio = mix_std * lax.rsqrt(x_var + eps)
        ratio_ref[...] = ratio
        offset_ref[...] = mix_mean - x_mean * ratio


def _adain_apply_kernel(x_ref, ratio_ref, offset_ref, o_ref):
    o_ref[...] = (x_ref[...].astype(jnp.float32) * ratio_ref[...]
                  + offset_ref[...]).astype(o_ref.dtype)


# ----------------------------------------------------------------------------
# Wrapper
# ----------------------------------------------------------------------------
def adain2d(x, in_style, out_style, *, eps=1e-5, alpha1=0.0, alpha2=0.0,
            max_block_bytes=None):
    """AdaIN-2d forward. x, in_style, out_style: (B, C, H, W), same shape."""
    b, c, h, w = x.shape
    hw = h * w
    rows = b * c

    # Fast path: with both mixing weights at 0 (the module defaults) the
    # result is mathematically x itself — skip all HBM traffic.
    if alpha1 == 0.0 and alpha2 == 0.0:
        return x

    itemsize = jnp.dtype(x.dtype).itemsize

    cap = _vmem_capacity_bytes()
    vmem_limit = min(int(cap * 0.875), 100 << 20)      # explicit scoped limit
    if max_block_bytes is None:
        max_block_bytes = int(vmem_limit * 0.6)        # headroom for regalloc

    mode, tr, thw = _plan_tiles(rows, hw, itemsize, max_block_bytes)

    xf = x.reshape(rows, hw)
    sif = in_style.reshape(rows, hw)
    sof = out_style.reshape(rows, hw)

    if mode == "fused":
        spec = pl.BlockSpec((tr, hw), lambda i: (i, 0))
        kernel = functools.partial(
            _adain_fused_kernel, eps=float(eps), w1=float(alpha1),
            w2=float(alpha2), hw=int(hw))
        out = pl.pallas_call(
            kernel,
            out_shape=jax.ShapeDtypeStruct((rows, hw), x.dtype),
            grid_spec=pl.GridSpec(
                grid=(pl.cdiv(rows, tr),),
                in_specs=[spec, spec, spec],
                out_specs=spec,
            ),
            compiler_params=pltpu.CompilerParams(
                dimension_semantics=("parallel",),
                vmem_limit_bytes=int(vmem_limit)),
        )(xf, sif, sof)
        return out.reshape(b, c, h, w)

    # ---- chunked-HW path ----
    nj = pl.cdiv(hw, thw)
    ni = pl.cdiv(rows, tr)
    in_spec = pl.BlockSpec((tr, thw), lambda i, j: (i, j))
    stat_spec = pl.BlockSpec((tr, 1), lambda i, j: (i, 0))

    stats_kernel = functools.partial(
        _adain_stats_kernel, eps=float(eps), w1=float(alpha1),
        w2=float(alpha2), hw=int(hw), thw=int(thw))

    ratio, offset = pl.pallas_call(
        stats_kernel,
        out_shape=(jax.ShapeDtypeStruct((rows, 1), jnp.float32),
                   jax.ShapeDtypeStruct((rows, 1), jnp.float32)),
        grid_spec=pltpu.PrefetchScalarGridSpec(
            num_scalar_prefetch=0,
            grid=(ni, nj),
            in_specs=[in_spec, in_spec, in_spec],
            out_specs=[stat_spec, stat_spec],
            scratch_shapes=[pltpu.VMEM((tr, 1), jnp.float32)] * 6,
        ),
        compiler_params=pltpu.CompilerParams(
            dimension_semantics=("parallel", "arbitrary"),
            vmem_limit_bytes=int(vmem_limit)),
    )(xf, sif, sof)

    out = pl.pallas_call(
        _adain_apply_kernel,
        out_shape=jax.ShapeDtypeStruct((rows, hw), x.dtype),
        grid_spec=pltpu.PrefetchScalarGridSpec(
            num_scalar_prefetch=0,
            grid=(ni, nj),
            in_specs=[in_spec, stat_spec, stat_spec],
            out_specs=in_spec,
        ),
        compiler_params=pltpu.CompilerParams(
            dimension_semantics=("parallel", "parallel"),
            vmem_limit_bytes=int(vmem_limit)),
    )(xf, ratio, offset)
    return out.reshape(b, c, h, w)


def adain2d_ref(x, in_style, out_style, *, eps=1e-5, alpha1=0.0, alpha2=0.0):
    """Pure-JAX reference mirroring the PyTorch module."""
    b, c, h, w = x.shape

    def stats(v):
        vf = v.reshape(b, c, -1).astype(jnp.float32)
        mean = vf.mean(axis=2).reshape(b, c, 1, 1)
        var = vf.var(axis=2, ddof=1).reshape(b, c, 1, 1) + eps
        return mean, jnp.sqrt(var)

    x_mean, x_std = stats(x)
    si_mean, si_std = stats(in_style)
    so_mean, so_std = stats(out_style)
    norm = (x.astype(jnp.float32) - x_mean) / x_std
    w0 = 1.0 - alpha1 - alpha2
    std = w0 * x_std + alpha1 * si_std + alpha2 * so_std
    mean = w0 * x_mean + alpha1 * si_mean + alpha2 * so_mean
    return (norm * std + mean).astype(x.dtype)


if __name__ == "__main__":
    key = jax.random.PRNGKey(0)
    k1, k2, k3, k4, k5, k6, k7, k8, k9 = jax.random.split(key, 9)
    alpha1, alpha2 = 0.3, 0.2  # module defaults are 0/0 (output == x)

    # Case 1: lane-aligned spatial, aligned rows -> fused path.
    B, C, H, W = 2, 4, 16, 16
    x = jax.random.normal(k1, (B, C, H, W), jnp.float32)
    si = jax.random.normal(k2, (B, C, H, W), jnp.float32) * 2.0 + 0.5
    so = jax.random.normal(k3, (B, C, H, W), jnp.float32) * 0.7 - 1.0

    out = jax.block_until_ready(adain2d(x, si, so, eps=1e-5,
                                        alpha1=alpha1, alpha2=alpha2))
    ref = adain2d_ref(x, si, so, eps=1e-5, alpha1=alpha1, alpha2=alpha2)
    assert out.shape == (B, C, H, W)
    assert jnp.allclose(out, ref, atol=1e-5, rtol=1e-5), \
        f"case1 max abs err = {jnp.max(jnp.abs(out - ref))}"

    # Case 1b: module-default mixing weights -> zero-traffic fast path.
    out0 = jax.block_until_ready(adain2d(x, si, so, eps=1e-5,
                                         alpha1=0.0, alpha2=0.0))
    ref0 = adain2d_ref(x, si, so, eps=1e-5, alpha1=0.0, alpha2=0.0)
    assert jnp.allclose(out0, ref0, atol=1e-5, rtol=1e-5), \
        f"case1b max abs err = {jnp.max(jnp.abs(out0 - ref0))}"

    # Case 2: non-128 spatial (10x10) + ragged row tiles (15 rows) -> fused
    # path relying on Pallas edge masking (no wrapper pad/slice passes).
    B2, C2, H2, W2 = 3, 5, 10, 10
    x2 = jax.random.normal(k4, (B2, C2, H2, W2), jnp.float32)
    si2 = jax.random.normal(k5, (B2, C2, H2, W2), jnp.float32) * 1.5 - 0.3
    so2 = jax.random.normal(k6, (B2, C2, H2, W2), jnp.float32) * 0.4 + 0.8
    out2 = jax.block_until_ready(adain2d(x2, si2, so2, eps=1e-5,
                                         alpha1=alpha1, alpha2=alpha2))
    ref2 = adain2d_ref(x2, si2, so2, eps=1e-5, alpha1=alpha1, alpha2=alpha2)
    assert out2.shape == (B2, C2, H2, W2)
    assert jnp.allclose(out2, ref2, atol=1e-5, rtol=1e-5), \
        f"case2 max abs err = {jnp.max(jnp.abs(out2 - ref2))}"

    # Case 3: chunked-HW fallback (forced via a tiny block budget), with a
    # ragged final chunk -> exercises sum/sumsq accumulation + lane masking.
    B3, C3, H3, W3 = 2, 4, 24, 24
    x3 = jax.random.normal(k7, (B3, C3, H3, W3), jnp.float32)
    si3 = jax.random.normal(k8, (B3, C3, H3, W3), jnp.float32) * 1.2 + 0.4
    so3 = jax.random.normal(k9, (B3, C3, H3, W3), jnp.float32) * 0.6 - 0.7
    out3 = jax.block_until_ready(adain2d(x3, si3, so3, eps=1e-5,
                                         alpha1=alpha1, alpha2=alpha2,
                                         max_block_bytes=64 * 1024))
    ref3 = adain2d_ref(x3, si3, so3, eps=1e-5, alpha1=alpha1, alpha2=alpha2)
    assert out3.shape == (B3, C3, H3, W3)
    assert jnp.allclose(out3, ref3, atol=1e-4, rtol=1e-4), \
        f"case3 max abs err = {jnp.max(jnp.abs(out3 - ref3))}"

    print("KERNEL_OK")
</pallas_src>

<mosaic_0001>
module attributes {stable_mosaic.version = 11 : i64} {
  func.func @_adain_fused_kernel(%arg0: i32, %arg1: memref<8x256xf32, #tpu.memory_space<vmem>>, %arg2: memref<8x256xf32, #tpu.memory_space<vmem>>, %arg3: memref<8x256xf32, #tpu.memory_space<vmem>>, %arg4: memref<8x256xf32, #tpu.memory_space<vmem>>) attributes {dimension_semantics = [#tpu.dimension_semantics<parallel>], iteration_bounds = array<i64: 1>, scalar_prefetch = 0 : i64, scratch_operands = 0 : i64, tpu.core_type = #tpu.core_type<tc>, window_params = [{transform_indices = @transform_0, window_bounds = array<i64: 8, 256>}, {transform_indices = @transform_1, window_bounds = array<i64: 8, 256>}, {transform_indices = @transform_2, window_bounds = array<i64: 8, 256>}, {transform_indices = @transform_3, window_bounds = array<i64: 8, 256>}]} {
    %c0 = arith.constant 0 : index
    %c0_0 = arith.constant 0 : index
    %0 = vector.load %arg1[%c0, %c0_0] : memref<8x256xf32, #tpu.memory_space<vmem>>, vector<8x256xf32>
    %cst = arith.constant dense<0.000000e+00> : vector<8xf32>
    %1 = vector.multi_reduction <add>, %0, %cst [1] : vector<8x256xf32> to vector<8xf32>
    %2 = vector.shape_cast %1 : vector<8xf32> to vector<8x1xf32>
    %cst_1 = arith.constant 3.906250e-03 : f32
    %3 = vector.broadcast %cst_1 : f32 to vector<8x1xf32>
    %4 = arith.mulf %2, %3 : vector<8x1xf32>
    %5 = vector.broadcast %4 : vector<8x1xf32> to vector<8x256xf32>
    %6 = arith.subf %0, %5 : vector<8x256xf32>
    %7 = arith.mulf %6, %6 : vector<8x256xf32>
    %cst_2 = arith.constant dense<0.000000e+00> : vector<8xf32>
    %8 = vector.multi_reduction <add>, %7, %cst_2 [1] : vector<8x256xf32> to vector<8xf32>
    %9 = vector.shape_cast %8 : vector<8xf32> to vector<8x1xf32>
    %cst_3 = arith.constant 0.00392156886 : f32
    %10 = vector.broadcast %cst_3 : f32 to vector<8x1xf32>
    %11 = arith.mulf %9, %10 : vector<8x1xf32>
    %c0_4 = arith.constant 0 : index
    %c0_5 = arith.constant 0 : index
    %12 = vector.load %arg2[%c0_4, %c0_5] : memref<8x256xf32, #tpu.memory_space<vmem>>, vector<8x256xf32>
    %cst_6 = arith.constant dense<0.000000e+00> : vector<8xf32>
    %13 = vector.multi_reduction <add>, %12, %cst_6 [1] : vector<8x256xf32> to vector<8xf32>
    %14 = vector.shape_cast %13 : vector<8xf32> to vector<8x1xf32>
    %cst_7 = arith.constant 3.906250e-03 : f32
    %15 = vector.broadcast %cst_7 : f32 to vector<8x1xf32>
    %16 = arith.mulf %14, %15 : vector<8x1xf32>
    %17 = vector.broadcast %16 : vector<8x1xf32> to vector<8x256xf32>
    %18 = arith.subf %12, %17 : vector<8x256xf32>
    %19 = arith.mulf %18, %18 : vector<8x256xf32>
    %cst_8 = arith.constant dense<0.000000e+00> : vector<8xf32>
    %20 = vector.multi_reduction <add>, %19, %cst_8 [1] : vector<8x256xf32> to vector<8xf32>
    %21 = vector.shape_cast %20 : vector<8xf32> to vector<8x1xf32>
    %cst_9 = arith.constant 0.00392156886 : f32
    %22 = vector.broadcast %cst_9 : f32 to vector<8x1xf32>
    %23 = arith.mulf %21, %22 : vector<8x1xf32>
    %c0_10 = arith.constant 0 : index
    %c0_11 = arith.constant 0 : index
    %24 = vector.load %arg3[%c0_10, %c0_11] : memref<8x256xf32, #tpu.memory_space<vmem>>, vector<8x256xf32>
    %cst_12 = arith.constant dense<0.000000e+00> : vector<8xf32>
    %25 = vector.multi_reduction <add>, %24, %cst_12 [1] : vector<8x256xf32> to vector<8xf32>
    %26 = vector.shape_cast %25 : vector<8xf32> to vector<8x1xf32>
    %cst_13 = arith.constant 3.906250e-03 : f32
    %27 = vector.broadcast %cst_13 : f32 to vector<8x1xf32>
    %28 = arith.mulf %26, %27 : vector<8x1xf32>
    %29 = vector.broadcast %28 : vector<8x1xf32> to vector<8x256xf32>
    %30 = arith.subf %24, %29 : vector<8x256xf32>
    %31 = arith.mulf %30, %30 : vector<8x256xf32>
    %cst_14 = arith.constant dense<0.000000e+00> : vector<8xf32>
    %32 = vector.multi_reduction <add>, %31, %cst_14 [1] : vector<8x256xf32> to vector<8xf32>
    %33 = vector.shape_cast %32 : vector<8xf32> to vector<8x1xf32>
    %cst_15 = arith.constant 0.00392156886 : f32
    %34 = vector.broadcast %cst_15 : f32 to vector<8x1xf32>
    %35 = arith.mulf %33, %34 : vector<8x1xf32>
    %cst_16 = arith.constant 9.99999974E-6 : f32
    %36 = vector.broadcast %cst_16 : f32 to vector<8x1xf32>
    %37 = arith.addf %11, %36 : vector<8x1xf32>
    %38 = math.sqrt %37 : vector<8x1xf32>
    %cst_17 = arith.constant 9.99999974E-6 : f32
    %39 = vector.broadcast %cst_17 : f32 to vector<8x1xf32>
    %40 = arith.addf %23, %39 : vector<8x1xf32>
    %41 = math.sqrt %40 : vector<8x1xf32>
    %cst_18 = arith.constant 9.99999974E-6 : f32
    %42 = vector.broadcast %cst_18 : f32 to vector<8x1xf32>
    %43 = arith.addf %35, %42 : vector<8x1xf32>
    %44 = math.sqrt %43 : vector<8x1xf32>
    %cst_19 = arith.constant 9.99999974E-6 : f32
    %45 = vector.broadcast %cst_19 : f32 to vector<8x1xf32>
    %46 = arith.addf %11, %45 : vector<8x1xf32>
    %47 = math.rsqrt %46 : vector<8x1xf32>
    %cst_20 = arith.constant 5.000000e-01 : f32
    %48 = vector.broadcast %cst_20 : f32 to vector<8x1xf32>
    %49 = arith.mulf %48, %38 : vector<8x1xf32>
    %cst_21 = arith.constant 3.000000e-01 : f32
    %50 = vector.broadcast %cst_21 : f32 to vector<8x1xf32>
    %51 = arith.mulf %50, %41 : vector<8x1xf32>
    %52 = arith.addf %49, %51 : vector<8x1xf32>
    %cst_22 = arith.constant 2.000000e-01 : f32
    %53 = vector.broadcast %cst_22 : f32 to vector<8x1xf32>
    %54 = arith.mulf %53, %44 : vector<8x1xf32>
    %55 = arith.addf %52, %54 : vector<8x1xf32>
    %cst_23 = arith.constant 5.000000e-01 : f32
    %56 = vector.broadcast %cst_23 : f32 to vector<8x1xf32>
    %57 = arith.mulf %56, %4 : vector<8x1xf32>
    %cst_24 = arith.constant 3.000000e-01 : f32
    %58 = vector.broadcast %cst_24 : f32 to vector<8x1xf32>
    %59 = arith.mulf %58, %16 : vector<8x1xf32>
    %60 = arith.addf %57, %59 : vector<8x1xf32>
    %cst_25 = arith.constant 2.000000e-01 : f32
    %61 = vector.broadcast %cst_25 : f32 to vector<8x1xf32>
    %62 = arith.mulf %61, %28 : vector<8x1xf32>
    %63 = arith.addf %60, %62 : vector<8x1xf32>
    %64 = arith.mulf %55, %47 : vector<8x1xf32>
    %65 = arith.mulf %4, %64 : vector<8x1xf32>
    %66 = arith.subf %63, %65 : vector<8x1xf32>
    %c0_26 = arith.constant 0 : index
    %c0_27 = arith.constant 0 : index
    %67 = vector.load %arg1[%c0_26, %c0_27] : memref<8x256xf32, #tpu.memory_space<vmem>>, vector<8x256xf32>
    %68 = vector.broadcast %64 : vector<8x1xf32> to vector<8x256xf32>
    %69 = arith.mulf %67, %68 : vector<8x256xf32>
    %70 = vector.broadcast %66 : vector<8x1xf32> to vector<8x256xf32>
    %71 = arith.addf %69, %70 : vector<8x256xf32>
    %c0_28 = arith.constant 0 : index
    %c0_29 = arith.constant 0 : index
    %72 = vector.load %arg4[%c0_28, %c0_29] : memref<8x256xf32, #tpu.memory_space<vmem>>, vector<8x256xf32>
    tpu.vector_store %arg4[%c0_28, %c0_29], %71 {strides = array<i32>} : memref<8x256xf32, #tpu.memory_space<vmem>>, vector<8x256xf32>,
    return
  }
  func.func @transform_0(%arg0: i32) -> (i32, i32) {
    %c0_i32 = arith.constant 0 : i32
    %c0_i32_0 = arith.constant 0 : i32
    return %arg0, %c0_i32 : i32, i32
  }
  func.func @transform_1(%arg0: i32) -> (i32, i32) {
    %c0_i32 = arith.constant 0 : i32
    %c0_i32_0 = arith.constant 0 : i32
    return %arg0, %c0_i32 : i32, i32
  }
  func.func @transform_2(%arg0: i32) -> (i32, i32) {
    %c0_i32 = arith.constant 0 : i32
    %c0_i32_0 = arith.constant 0 : i32
    return %arg0, %c0_i32 : i32, i32
  }
  func.func @transform_3(%arg0: i32) -> (i32, i32) {
    %c0_i32 = arith.constant 0 : i32
    %c0_i32_0 = arith.constant 0 : i32
    return %arg0, %c0_i32 : i32, i32
  }
}

</mosaic_0001>

<bundles_post_ra>
// kernel: tpu_custom_call.1
= control target key start
LH: loop header
LB: loop body
LE: loop exit
PB: predicated region body
PF: predicated region fallthrough
CT: control target
= control target key end

     0   :  { %8 = vsyncpa [#allocation3], 0  ;;  %s344_s0 = inlined_call_operand.hbm [shape: f32[8,256], index: 0, kind: input, shape index: {}]   ;;  %s345_s1 = inlined_call_operand.hbm [shape: f32[8,256], index: 1, kind: input, shape index: {}]   ;;  %s346_s2 = inlined_call_operand.hbm [shape: f32[8,256], index: 2, kind: input, shape index: {}]   ;;  %s347_s3 = inlined_call_operand.hbm [shape: f32[8,256], index: 3, kind: output, shape index: {}]  }
   0x1   :  { %9 = vsyncpa [#allocation6], 0 }
   0x2   :  { %10 = vsyncpa [#allocation4], 0  ;;  %s256_s12 = smov [#allocation5]   ;;  %s257_s14 = smov [#allocation2]  }
   0x3   :  { %s27_s13 = sshll.u32 %s256_s12, 4  ;;  %s17_s15 = sshll.u32 %s257_s14, 4  ;;  %s28_s13 = int_to_ptr.vmem [resolvable:$true] %s27_s13  ;;  %s18_s15 = int_to_ptr.vmem [resolvable:$true] %s17_s15 }
   0x4   :  { %s162_s18 = scalar_lea.hbm %s345_s1, 256 }
   0x5   :  { %p163_p0 = scmp.ne.s32.totalorder %s345_s1, %s162_s18  ;;  %p166_p1 = scmp.lt.u32.totalorder %s162_s18, %s345_s1 }
   0x7   :  { %p168_p2 = pnand %p166_p1, %p163_p0 }
   0x9   :  { %171 = shalt.err (!%p168_p2)
}
   0xa   :  { %s172_s23 = scalar_lea.vmem %s28_s13, 256  ;;  %p177_p4 = scmp.lt.s32.totalorder %s28_s13, %s28_s13 }
   0xb   :  { %p173_p3 = scmp.ne.s32.totalorder %s28_s13, %s172_s23  ;;  %p178_p5 = scmp.lt.s32.totalorder %s172_s23, %s172_s23 }
   0xd   :  { %p179_p6 = por %p178_p5, %p177_p4 }
   0xf   :  { %p180_p7 = pnand %p179_p6, %p173_p3 }
  0x11   :  { %183 = shalt.err (!%p180_p7)
}
  0x12   :  { %30 = dma.hbm_to_vmem [thread:$0]  %s345_s1, 256, %s28_s13, [#allocation6]  }
  0x13   :  { %s184_s28 = scalar_lea.hbm %s344_s0, 256 }
  0x14   :  { %p185_p8 = scmp.ne.s32.totalorder %s344_s0, %s184_s28  ;;  %p188_p9 = scmp.lt.u32.totalorder %s184_s28, %s344_s0 }
  0x16   :  { %p190_p10 = pnand %p188_p9, %p185_p8 }
  0x18   :  { %193 = shalt.err (!%p190_p10)
}
  0x19   :  { %s194_s6 = scalar_lea.vmem %s18_s15, 256  ;;  %p199_p12 = scmp.lt.s32.totalorder %s18_s15, %s18_s15 }
  0x1a   :  { %p195_p11 = scmp.ne.s32.totalorder %s18_s15, %s194_s6  ;;  %p200_p13 = scmp.lt.s32.totalorder %s194_s6, %s194_s6 }
  0x1c   :  { %p201_p0 = por %p200_p13, %p199_p12 }
  0x1e   :  { %p202_p1 = pnand %p201_p0, %p195_p11 }
  0x20   :  { %205 = shalt.err (!%p202_p1)
}
  0x21   :  { %20 = dma.hbm_to_vmem [thread:$0]  %s344_s0, 256, %s18_s15, [#allocation3]  }
  0x22   :  { %s258_s8 = smov [#allocation7]   ;;  %s206_s12 = scalar_lea.hbm %s346_s2, 256 }
  0x23   :  { %s37_s9 = sshll.u32 %s258_s8, 4  ;;  %p207_p2 = scmp.ne.s32.totalorder %s346_s2, %s206_s12  ;;  %s38_s9 = int_to_ptr.vmem [resolvable:$true] %s37_s9 }
  0x24   :  { %p210_p3 = scmp.lt.u32.totalorder %s206_s12, %s346_s2 }
  0x26   :  { %p212_p4 = pnand %p210_p3, %p207_p2 }
  0x28   :  { %215 = shalt.err (!%p212_p4)
}
  0x29   :  { %s216_s18 = scalar_lea.vmem %s38_s9, 256  ;;  %p221_p6 = scmp.lt.s32.totalorder %s38_s9, %s38_s9 }
  0x2a   :  { %p217_p5 = scmp.ne.s32.totalorder %s38_s9, %s216_s18  ;;  %p222_p7 = scmp.lt.s32.totalorder %s216_s18, %s216_s18 }
  0x2c   :  { %p223_p8 = por %p222_p7, %p221_p6 }
  0x2e   :  { %p224_p9 = pnand %p223_p8, %p217_p5 }
  0x30   :  { %227 = shalt.err (!%p224_p9)
}
  0x31   :  { %40 = dma.hbm_to_vmem [thread:$0]  %s346_s2, 256, %s38_s9, [#allocation6]  }
  0x32   :  { %250 = dma.done.wait [#allocation3], 256  }
  0x33   :  { %251 = vsyncadd [#allocation3], 4294967040 }
  0x34   :  { %252 = dma.done.wait [#allocation6], 512  }
  0x35   :  { %253 = vsyncadd [#allocation6], 4294966784  ;;  %v316_v0 = vld [vmem:[#allocation2] sm:$0xff]  ;;  %v318_v1 = vld [vmem:[#allocation2 + $0x8] sm:$0xff]  ;;  %s259_s2 = smov [#allocation8]  }
  0x36   :  { %v78_v2 = vld [vmem:[#allocation7] sm:$0xff]  ;;  %v52_v3 = vadd.f32 %v318_v1, %v316_v0  ;;  %v79_v4 = vld [vmem:[#allocation7 + $0x8] sm:$0xff]  ;;  %v64_v5 = vld [vmem:[#allocation5] sm:$0xff]  ;;  %s142_s19 = sshll.u32 %s259_s2, 4  ;;  %s143_s19 = int_to_ptr.vmem [resolvable:$true] %s142_s19 }
  0x37   :  { %v65_v6 = vld [vmem:[#allocation5 + $0x8] sm:$0xff]  ;;  %v80_v7 = vadd.f32 %v79_v4, %v78_v2  ;;  %s228_s20 = scalar_lea.vmem %s143_s19, 256  ;;  %p233_p11 = scmp.lt.s32.totalorder %s143_s19, %s143_s19 }
  0x38   :  { %53 = vadd.xlane.f32.xlu0 %v52_v3  ;;  %v66_v8 = vadd.f32 %v65_v6, %v64_v5  ;;  %p229_p10 = scmp.ne.s32.totalorder %s143_s19, %s228_s20  ;;  %p234_p12 = scmp.lt.s32.totalorder %s228_s20, %s228_s20 }
  0x39   :  { %81 = vadd.xlane.f32.xlu1 %v80_v7 }
  0x3a   :  { %p235_p13 = por %p234_p12, %p233_p11 }
  0x3c   :  { %67 = vadd.xlane.f32.xlu0 %v66_v8  ;;  %p236_p0 = pnand %p235_p13, %p229_p10 }
  0xc5   :  { %v54_v9 = vpop.xlane.xlu0 %53 }
  0xc6   :  { %v322_v10 = vmul.f32 0.00390625, %v54_v9  ;;  %v82_v11 = vpop.xlane.xlu1 %81 }
  0xc7   :  { %v83_v12 = vmul.f32 0.00390625, %v82_v11 }
  0xc8   :  { %v56_v13 = vsub.f32 %v316_v0, %v322_v10  ;;  %v57_v14 = vsub.f32 %v318_v1, %v322_v10  ;;  %v122_v21 = vmul.f32 0.5, %v322_v10 }
  0xc9   :  { %v68_v15 = vpop.xlane.xlu0 %67  ;;  %v84_v16 = vsub.f32 %v78_v2, %v83_v12  ;;  %v85_v17 = vsub.f32 %v79_v4, %v83_v12  ;;  %v125_v22 = vmul.f32 0.2, %v83_v12 }
  0xca   :  { %v69_v18 = vmul.f32 0.00390625, %v68_v15  ;;  %v58_v19 = vmul.f32 %v56_v13, %v56_v13  ;;  %v59_v20 = vmul.f32 %v57_v14, %v57_v14 }
  0xcb   :  { %v86_v23 = vmul.f32 %v84_v16, %v84_v16  ;;  %v87_v24 = vmul.f32 %v85_v17, %v85_v17 }
  0xcc   :  { %v123_v25 = vmul.f32 0.3, %v69_v18  ;;  %v60_v26 = vadd.f32 %v59_v20, %v58_v19  ;;  %v70_v27 = vsub.f32 %v64_v5, %v69_v18  ;;  %v71_v28 = vsub.f32 %v65_v6, %v69_v18 }
  0xcd   :  { %v88_v30 = vadd.f32 %v87_v24, %v86_v23 }
  0xce   :  { %v124_v29 = vadd.f32 %v123_v25, %v122_v21  ;;  %61 = vadd.xlane.f32.xlu1 %v60_v26  ;;  %v72_v31 = vmul.f32 %v70_v27, %v70_v27  ;;  %v73_v32 = vmul.f32 %v71_v28, %v71_v28 }
  0xd0   :  { %v126_v33 = vadd.f32 %v125_v22, %v124_v29  ;;  %v74_v34 = vadd.f32 %v73_v32, %v72_v31 }
  0xd2   :  { %89 = vadd.xlane.f32.xlu1 %v88_v30  ;;  %75 = vadd.xlane.f32.xlu0 %v74_v34 }
 0x15b   :  { %v62_v35 = vpop.xlane.xlu1 %61 }
 0x15c   :  { %v63_v36 = vmul.f32 0.003921569, %v62_v35 }
 0x15e   :  { %v92_v37 = vadd.f32 1e-05, %v63_v36 }
 0x15f   :  { %v90_v38 = vpop.xlane.xlu1 %89  ;;  %v76_v39 = vpop.xlane.xlu0 %75 }
 0x160   :  { %156 = vrsqrt.f32 %v92_v37  ;;  %v91_v40 = vmul.f32 0.003921569, %v90_v38  ;;  %v77_v41 = vmul.f32 0.003921569, %v76_v39  ;;  %vm95_vm0 = vcmp.eq.f32.partialorder %v92_v37, inf }
 0x161   :  { %v98_v49 = vand.u32 2147483648, %v92_v37  ;;  %vm97_vm1 = vcmp.eq.f32.partialorder %v92_v37, 0.0 }
 0x162   :  { %v108_v42 = vadd.f32 1e-05, %v91_v40  ;;  %v100_v43 = vadd.f32 1e-05, %v77_v41 }
 0x164   :  { %158 = vrsqrt.f32 %v108_v42  ;;  %vm111_vm2 = vcmp.eq.f32.partialorder %v108_v42, inf  ;;  %v114_v51 = vand.u32 2147483648, %v108_v42  ;;  %vm103_vm3 = vcmp.eq.f32.partialorder %v100_v43, inf }
 0x165   :  { %160 = vrsqrt.f32 %v100_v43  ;;  %v106_v54 = vand.u32 2147483648, %v100_v43  ;;  %vm113_vm4 = vcmp.eq.f32.partialorder %v108_v42, 0.0  ;;  %vm105_vm5 = vcmp.eq.f32.partialorder %v100_v43, 0.0 }
 0x16a   :  { %v157_v44 = vpop.eup %156 }
 0x16b   :  { %v94_v45 = vmul.f32 %v157_v44, %v92_v37 }
 0x16d   :  { %v96_v47 = vsel %vm95_vm0, %v92_v37, %v94_v45 }
 0x16e   :  { %v159_v46 = vpop.eup %158  ;;  %v99_v55 = vsel %vm97_vm1, %v98_v49, %v96_v47 }
 0x16f   :  { %v161_v48 = vpop.eup %160  ;;  %v110_v50 = vmul.f32 %v159_v46, %v108_v42  ;;  %v117_v59 = vmul.f32 0.5, %v99_v55 }
 0x170   :  { %v102_v52 = vmul.f32 %v161_v48, %v100_v43 }
 0x171   :  { %v112_v53 = vsel %vm111_vm2, %v108_v42, %v110_v50 }
 0x172   :  { %v104_v56 = vsel %vm103_vm3, %v100_v43, %v102_v52  ;;  %v115_v58 = vsel %vm113_vm4, %v114_v51, %v112_v53 }
 0x173   :  { %v107_v57 = vsel %vm105_vm5, %v106_v54, %v104_v56  ;;  %v120_v62 = vmul.f32 0.2, %v115_v58 }
 0x174   :  { %v118_v60 = vmul.f32 0.3, %v107_v57 }
 0x176   :  { %v119_v61 = vadd.f32 %v118_v60, %v117_v59 }
 0x178   :  { %v121_v63 = vadd.f32 %v120_v62, %v119_v61 }
 0x17a   :  { %v127_v2 = vmul.f32 %v157_v44, %v121_v63 }
 0x17c   :  { %v128_v3 = vmul.f32 %v127_v2, %v322_v10  ;;  %v130_v5 = vmul.f32 %v127_v2, %v316_v0  ;;  %v131_v6 = vmul.f32 %v127_v2, %v318_v1 }
 0x17e   :  { %v129_v4 = vsub.f32 %v126_v33, %v128_v3 }
 0x180   :  { %v132_v7 = vadd.f32 %v130_v5, %v129_v4  ;;  %v133_v8 = vadd.f32 %v131_v6, %v129_v4 }
 0x182   :  { %134 = vst [vmem:[#allocation8] sm:$0xff] %v132_v7  ;;  %135 = vst [vmem:[#allocation8 + $0x8] sm:$0xff] %v133_v8 }
 0x183   :  { %239 = shalt.err (!%p236_p0)
}
 0x184   :  { %s240_s23 = scalar_lea.hbm %s347_s3, 256 }
 0x185   :  { %p241_p1 = scmp.ne.s32.totalorder %s347_s3, %s240_s23  ;;  %p244_p2 = scmp.lt.u32.totalorder %s240_s23, %s347_s3 }
 0x187   :  { %p246_p3 = pnand %p244_p2, %p241_p1 }
 0x189   :  { %249 = shalt.err (!%p246_p3)
}
 0x18a   :  { %145 = dma.vmem_to_hbm [thread:$0]  %s143_s19, 256, %s347_s3, [#allocation4]  }
 0x18b   :  { %254 = dma.done.wait [#allocation4], 256  }
 0x18c   :  { %255 = vsyncadd [#allocation4], 4294967040 }
 0x18d   :  { %149 = vsyncpa [#allocation3], 1 }
 0x18e   :  { %150 = vsyncpa [#allocation6], 1 }
 0x18f   :  { %151 = vsyncpa [#allocation4], 1 }

</bundles_post_ra>
